<compile_context>
chip_gen: v5e
topology: v5e:2x2
jax: 0.10.0
libtpu: 0.0.40
codegen_flags: <defaults>
</compile_context>

<pallas_src>
import functools

import jax
import jax.numpy as jnp
from jax import lax
from jax.experimental import pallas as pl
from jax.experimental.pallas import tpu as pltpu


def _round_up(x, m):
    return (x + m - 1) // m * m


def _vmem_limit(bytes_needed):
    # Explicit scoped-VMEM request with headroom; stays under v7x's 64 MiB.
    return int(min(max(2 * bytes_needed, 16 * 1024 * 1024), 48 * 1024 * 1024))


# ---------------------------------------------------------------------------
# Kernel A: location encoder (2-layer MLP + L2 norm), run ONCE over the queue.
# ---------------------------------------------------------------------------
def _loc_encoder_kernel(loc_f_ref, w1_ref, w2_ref, emb_ref):
    f32 = jnp.float32
    h = jnp.dot(loc_f_ref[...], w1_ref[...], preferred_element_type=f32)
    h = jnp.maximum(h, 0.0).astype(jnp.bfloat16)
    e = jnp.dot(h, w2_ref[...], preferred_element_type=f32)
    emb_ref[...] = e * lax.rsqrt(jnp.sum(e * e, axis=-1, keepdims=True) + 1e-12)


def _encode_locations(loc_feat, w1, w2):
    n_pad, d = loc_feat.shape
    tl = 128
    grid = n_pad // tl
    vmem_need = 2 * tl * d * 2 + 2 * d * d * 2 + 2 * tl * d * 4
    cost = pl.CostEstimate(
        flops=4 * n_pad * d * d,
        transcendentals=n_pad,
        bytes_accessed=n_pad * d * 2 + 2 * d * d * 2 + n_pad * d * 4)
    return pl.pallas_call(
        _loc_encoder_kernel,
        out_shape=jax.ShapeDtypeStruct((n_pad, d), jnp.float32),
        grid_spec=pltpu.PrefetchScalarGridSpec(
            num_scalar_prefetch=0,
            grid=(grid,),
            in_specs=[
                pl.BlockSpec((tl, d), lambda i: (i, 0)),
                # loop-invariant weights: single-buffer to halve VMEM footprint
                pl.BlockSpec((d, d), lambda i: (0, 0), pipeline_mode=pl.Buffered(1)),
                pl.BlockSpec((d, d), lambda i: (0, 0), pipeline_mode=pl.Buffered(1)),
            ],
            out_specs=pl.BlockSpec((tl, d), lambda i: (i, 0)),
        ),
        compiler_params=pltpu.CompilerParams(
            dimension_semantics=("parallel",),
            vmem_limit_bytes=_vmem_limit(vmem_need)),
        cost_estimate=cost,
    )(loc_feat, w1, w2)


# ---------------------------------------------------------------------------
# Kernel B: image projection + logits + per-row cross entropy (online softmax)
# ---------------------------------------------------------------------------
def _clip_ce_kernel(scale_ref,    # SMEM (1,)       f32  : exp(logit_scale)
                    img_x_ref,    # VMEM (tm, F)    bf16 : flattened image tile
                    w_img_ref,    # VMEM (F, D)     bf16 : image projection (invariant)
                    loc_t_ref,    # VMEM (D, tn)    bf16 : loc_emb^T queue tile
                    loc_d_ref,    # VMEM (tm, D)    f32  : target-row loc embeddings
                    ce_ref,       # VMEM (tm, 1)    f32  : per-row CE (written at last n)
                    img_sc,       # VMEM (tm, D)    bf16 : cached scaled image embedding
                    m_sc,         # VMEM (tm, 1)    f32  : running max
                    l_sc,         # VMEM (tm, 1)    f32  : running sum-exp
                    d_sc,         # VMEM (tm, 1)    f32  : diagonal (target) logit
                    *, n_valid):
    n = pl.program_id(1)
    f32 = jnp.float32

    # ---- once per batch tile (first queue step): image embedding + diag term
    @pl.when(n == 0)
    def _():
        img = jnp.dot(img_x_ref[...], w_img_ref[...], preferred_element_type=f32)
        # fold exp(logit_scale) into the (tm,1) row normalizer -> no multiply
        # ever touches a (tm, tn) logits tile.
        img = img * (scale_ref[0] * lax.rsqrt(
            jnp.sum(img * img, axis=-1, keepdims=True) + 1e-12))
        # diag term from f32 operands already live: row i of this tile pairs
        # with loc row (program_id(0)*tm + i), which is exactly loc_d_ref.
        d_sc[...] = jnp.sum(img * loc_d_ref[...], axis=-1, keepdims=True)
        img_sc[...] = img.astype(jnp.bfloat16)
        m_sc[...] = jnp.full(m_sc.shape, -1e30, f32)
        l_sc[...] = jnp.zeros(l_sc.shape, f32)

    # ---- logits for this (batch tile, queue tile): (tm, tn), bf16 MXU, f32 acc.
    #      loc_t is (D, N)-layout so no per-step transpose of the queue embeddings.
    s = jnp.dot(img_sc[...], loc_t_ref[...], preferred_element_type=f32)
    if n_valid is not None:
        # mask queue columns that only exist because N was padded to a lane multiple
        col = n * loc_t_ref.shape[1] + lax.broadcasted_iota(jnp.int32, s.shape, 1)
        s = jnp.where(col < n_valid, s, -1e30)

    # ---- online softmax accumulation over the queue axis
    m_new = jnp.maximum(m_sc[...], jnp.max(s, axis=-1, keepdims=True))
    alpha = jnp.exp(m_sc[...] - m_new)
    l_sc[...] = alpha * l_sc[...] + jnp.sum(jnp.exp(s - m_new), axis=-1, keepdims=True)
    m_sc[...] = m_new

    # ---- finalize: per-row cross entropy = logsumexp - logits[target]
    @pl.when(n == pl.num_programs(1) - 1)
    def _():
        ce_ref[...] = (jnp.log(l_sc[...]) + m_sc[...]) - d_sc[...]


def _fused_loss(scale, img_x, w_img, loc_emb, n_valid):
    B, F = img_x.shape
    n_pad, D = loc_emb.shape

    # Batch tile: >= 2 tiles once B is non-trivial so both v7x TensorCores get
    # work; multiple of 8 sublanes; capped at 256 rows (v6e/v7x 2x256 MXU;
    # v5e's 4x128 MXU is already full at 128 — shrink there if profiling says so).
    if B >= 16:
        tm = min(256, _round_up(-(-B // 2), 8))
    else:
        tm = _round_up(B, 8)
    b_pad = _round_up(B, tm)
    if b_pad != B:
        img_x = jnp.pad(img_x, ((0, b_pad - B), (0, 0)))
    grid_m = b_pad // tm

    # Queue tile: <= 512 lanes so the (tm, tn) logits tile stays at ~64-128 vregs.
    tn = 512 if n_pad % 512 == 0 else (256 if n_pad % 256 == 0 else 128)
    grid_n = n_pad // tn

    # Layout plumbing, once, outside the grid.
    loc_t = loc_emb.astype(jnp.bfloat16).T                       # (D, N_pad)
    loc_diag = jnp.pad(loc_emb[:B], ((0, b_pad - B), (0, 0)))    # (b_pad, D) f32

    mask_n = n_valid if n_valid != n_pad else None

    vmem_need = (2 * tm * F * 2          # image tile (double buffered)
                 + F * D * 2             # w_img (single buffered)
                 + 2 * D * tn * 2        # loc_emb^T tile
                 + 2 * tm * D * 4        # target-row embeddings
                 + 2 * tm * 4            # output
                 + tm * D * 2 + 3 * tm * 4)  # scratch
    cost = pl.CostEstimate(
        flops=2 * b_pad * F * D + 2 * b_pad * n_pad * D + 2 * b_pad * D,
        transcendentals=b_pad * n_pad + 3 * b_pad,
        bytes_accessed=(b_pad * F * 2 + F * D * 2 + D * n_pad * 2
                        + b_pad * D * 4 + b_pad * 4 + 4))

    smem = pl.BlockSpec(memory_space=pltpu.MemorySpace.SMEM)
    per_row = pl.pallas_call(
        functools.partial(_clip_ce_kernel, n_valid=mask_n),
        out_shape=jax.ShapeDtypeStruct((b_pad, 1), jnp.float32),
        grid_spec=pltpu.PrefetchScalarGridSpec(
            num_scalar_prefetch=0,
            grid=(grid_m, grid_n),
            in_specs=[
                smem,                                           # exp(logit_scale)
                pl.BlockSpec((tm, F), lambda i, n: (i, 0)),     # image tile
                pl.BlockSpec((F, D), lambda i, n: (0, 0),
                             pipeline_mode=pl.Buffered(1)),     # w_img (invariant)
                pl.BlockSpec((D, tn), lambda i, n: (0, n)),     # loc_emb^T queue tile
                pl.BlockSpec((tm, D), lambda i, n: (i, 0)),     # target-row loc emb
            ],
            out_specs=pl.BlockSpec((tm, 1), lambda i, n: (i, 0)),
            scratch_shapes=[
                pltpu.VMEM((tm, D), jnp.bfloat16),   # cached image embedding
                pltpu.VMEM((tm, 1), jnp.float32),    # running max
                pltpu.VMEM((tm, 1), jnp.float32),    # running sum-exp
                pltpu.VMEM((tm, 1), jnp.float32),    # diagonal logit
            ],
        ),
        compiler_params=pltpu.CompilerParams(
            dimension_semantics=("parallel", "arbitrary"),
            vmem_limit_bytes=_vmem_limit(vmem_need)),
        cost_estimate=cost,
    )(scale, img_x, w_img, loc_t, loc_diag)

    # Mean reduction over the real batch rows (padded rows dropped here).
    # TODO(synk): at extreme F, also tile the F contraction with an accumulator.
    return jnp.sum(per_row[:B, 0]) / B


# ---------------------------------------------------------------------------
# JAX wrapper = SemiPenaltyLoss.forward (glue: noise, concat, fourier features)
# ---------------------------------------------------------------------------
@functools.partial(jax.jit, static_argnames=("batch_size",))
def semi_penalty_forward(imgs, gps, batch_size, params, noise_key):
    gps_queue = params["gps_queue"]                                     # (Q, 2)
    # TODO(synk): model.get_img_queue() / get_penalty (haversine + cosine
    #             distances, semivariogram pickle) are fetched/defined in the
    #             reference forward but do not affect the returned loss value.

    # gps_queue = gps_queue + randn_like(gps_queue) * (1000 / 111320)
    noise = jax.random.normal(noise_key, gps_queue.shape,
                              dtype=gps_queue.dtype) * (1000.0 / 111320.0)
    gps_queue = gps_queue + noise

    # gps_all = cat([gps, gps_queue], dim=0)
    gps_all = jnp.concatenate([gps, gps_queue], axis=0)                 # (N, 2)
    n_total = gps_all.shape[0]

    # location fourier features (glue), padded once to a lane multiple so the
    # queue axis can be tiled by the CE kernel.
    proj = gps_all @ params["loc_freqs"]                                # (N, D/2)
    loc_feat = jnp.concatenate([jnp.sin(proj), jnp.cos(proj)], axis=-1)  # (N, D)
    n_pad = _round_up(n_total, 128)
    loc_feat = jnp.pad(loc_feat, ((0, n_pad - n_total), (0, 0))).astype(jnp.bfloat16)

    # location branch hoisted out of the batch grid: MLP + L2 norm run once.
    loc_emb = _encode_locations(loc_feat,
                                params["w_loc1"].astype(jnp.bfloat16),
                                params["w_loc2"].astype(jnp.bfloat16))  # (N_pad, D) f32

    img_x = imgs.reshape(batch_size, -1).astype(jnp.bfloat16)           # (B, F)
    scale = jnp.exp(params["logit_scale"]).reshape(1).astype(jnp.float32)

    loss = _fused_loss(scale, img_x, params["w_img"].astype(jnp.bfloat16),
                       loc_emb, n_total)

    # TODO(synk): model.dequeue_and_enqueue(gps), model.img_dequeue_and_enqueue(imgs)
    #             and the queue_initialized flag are stateful host-side queue
    #             updates with no effect on the returned loss.
    return loss


# ---------------------------------------------------------------------------
# Deterministic synthetic parameter init
# ---------------------------------------------------------------------------
def init_params(key, feat_dim, emb_dim, queue_size):
    k_q, k_f, k_wi, k_w1, k_w2 = jax.random.split(key, 5)
    return {
        # model.get_gps_queue(): queue of (lat, lon) pairs
        "gps_queue": jnp.stack(
            [jax.random.uniform(k_q, (queue_size,), minval=-90.0, maxval=90.0),
             jax.random.uniform(jax.random.fold_in(k_q, 1), (queue_size,),
                                minval=-180.0, maxval=180.0)], axis=-1
        ).astype(jnp.float32),
        # random-fourier-feature frequencies for the location encoder
        "loc_freqs": jax.random.normal(k_f, (2, emb_dim // 2), jnp.float32) * 0.5,
        # image projection
        "w_img": jax.random.normal(k_wi, (feat_dim, emb_dim), jnp.float32)
                 * (1.0 / jnp.sqrt(feat_dim)),
        # location MLP
        "w_loc1": jax.random.normal(k_w1, (emb_dim, emb_dim), jnp.float32)
                  * (1.0 / jnp.sqrt(emb_dim)),
        "w_loc2": jax.random.normal(k_w2, (emb_dim, emb_dim), jnp.float32)
                  * (1.0 / jnp.sqrt(emb_dim)),
        # CLIP-style temperature
        "logit_scale": jnp.asarray(jnp.log(1.0 / 0.07), jnp.float32),
    }


if __name__ == "__main__":
    # Small shapes consistent with the forward: imgs NCHW, gps (B, 2).
    B, C, H, W = 4, 3, 16, 16
    QUEUE_SIZE = 12
    FEAT_DIM = C * H * W        # 768
    EMB_DIM = 128

    root = jax.random.PRNGKey(0)
    k_params, k_imgs, k_gps, k_noise = jax.random.split(root, 4)

    params = init_params(k_params, FEAT_DIM, EMB_DIM, QUEUE_SIZE)
    imgs = jax.random.normal(k_imgs, (B, C, H, W), jnp.float32)
    gps = jnp.stack(
        [jax.random.uniform(k_gps, (B,), minval=-90.0, maxval=90.0),
         jax.random.uniform(jax.random.fold_in(k_gps, 1), (B,),
                            minval=-180.0, maxval=180.0)], axis=-1
    ).astype(jnp.float32)

    loss = semi_penalty_forward(imgs, gps, B, params, k_noise)
    loss = jax.block_until_ready(loss)
    assert loss.shape == () and jnp.isfinite(loss)
    print("KERNEL_OK")
</pallas_src>

<mosaic_0001>
module attributes {stable_mosaic.version = 11 : i64} {
  func.func @_loc_encoder_kernel(%arg0: i32, %arg1: memref<128x128xbf16, #tpu.memory_space<vmem>>, %arg2: memref<128x128xbf16, #tpu.memory_space<vmem>>, %arg3: memref<128x128xbf16, #tpu.memory_space<vmem>>, %arg4: memref<128x128xf32, #tpu.memory_space<vmem>>) attributes {dimension_semantics = [#tpu.dimension_semantics<parallel>], iteration_bounds = array<i64: 1>, scalar_prefetch = 0 : i64, scratch_operands = 0 : i64, tpu.core_type = #tpu.core_type<tc>, window_params = [{transform_indices = @transform_0, window_bounds = array<i64: 128, 128>}, {pipeline_mode = #tpu.pipeline_mode<synchronous>, transform_indices = @transform_1, window_bounds = array<i64: 128, 128>}, {pipeline_mode = #tpu.pipeline_mode<synchronous>, transform_indices = @transform_2, window_bounds = array<i64: 128, 128>}, {transform_indices = @transform_3, window_bounds = array<i64: 128, 128>}]} {
    %c0 = arith.constant 0 : index
    %c0_0 = arith.constant 0 : index
    %0 = vector.load %arg1[%c0, %c0_0] : memref<128x128xbf16, #tpu.memory_space<vmem>>, vector<128x128xbf16>
    %c0_1 = arith.constant 0 : index
    %c0_2 = arith.constant 0 : index
    %1 = vector.load %arg2[%c0_1, %c0_2] : memref<128x128xbf16, #tpu.memory_space<vmem>>, vector<128x128xbf16>
    %cst = arith.constant dense<0.000000e+00> : vector<128x128xf32>
    %2 = tpu.matmul %0, %1, %cst {dimension_numbers = #tpu.dot_dimension_numbers<[1], [0], [0], [1], [0, 0, 1, 1], [], []>} : vector<128x128xbf16>, vector<128x128xbf16>, vector<128x128xf32> -> vector<128x128xf32>
    %cst_3 = arith.constant 0.000000e+00 : f32
    %3 = vector.broadcast %cst_3 : f32 to vector<128x128xf32>
    %4 = arith.maximumf %2, %3 : vector<128x128xf32>
    %5 = arith.truncf %4 : vector<128x128xf32> to vector<128x128xbf16>
    %c0_4 = arith.constant 0 : index
    %c0_5 = arith.constant 0 : index
    %6 = vector.load %arg3[%c0_4, %c0_5] : memref<128x128xbf16, #tpu.memory_space<vmem>>, vector<128x128xbf16>
    %cst_6 = arith.constant dense<0.000000e+00> : vector<128x128xf32>
    %7 = tpu.matmul %5, %6, %cst_6 {dimension_numbers = #tpu.dot_dimension_numbers<[1], [0], [0], [1], [0, 0, 1, 1], [], []>} : vector<128x128xbf16>, vector<128x128xbf16>, vector<128x128xf32> -> vector<128x128xf32>
    %8 = arith.mulf %7, %7 : vector<128x128xf32>
    %cst_7 = arith.constant dense<0.000000e+00> : vector<128xf32>
    %9 = vector.multi_reduction <add>, %8, %cst_7 [1] : vector<128x128xf32> to vector<128xf32>
    %10 = vector.shape_cast %9 : vector<128xf32> to vector<128x1xf32>
    %cst_8 = arith.constant 9.99999996E-13 : f32
    %11 = vector.broadcast %cst_8 : f32 to vector<128x1xf32>
    %12 = arith.addf %10, %11 : vector<128x1xf32>
    %13 = math.rsqrt %12 : vector<128x1xf32>
    %14 = vector.broadcast %13 : vector<128x1xf32> to vector<128x128xf32>
    %15 = arith.mulf %7, %14 : vector<128x128xf32>
    %c0_9 = arith.constant 0 : index
    %c0_10 = arith.constant 0 : index
    %16 = vector.load %arg4[%c0_9, %c0_10] : memref<128x128xf32, #tpu.memory_space<vmem>>, vector<128x128xf32>
    tpu.vector_store %arg4[%c0_9, %c0_10], %15 {strides = array<i32>} : memref<128x128xf32, #tpu.memory_space<vmem>>, vector<128x128xf32>,
    return
  }
  func.func @transform_0(%arg0: i32) -> (i32, i32) {
    %c0_i32 = arith.constant 0 : i32
    %c0_i32_0 = arith.constant 0 : i32
    return %arg0, %c0_i32 : i32, i32
  }
  func.func @transform_1(%arg0: i32) -> (i32, i32) {
    %c0_i32 = arith.constant 0 : i32
    %c0_i32_0 = arith.constant 0 : i32
    %c0_i32_1 = arith.constant 0 : i32
    return %c0_i32, %c0_i32_0 : i32, i32
  }
  func.func @transform_2(%arg0: i32) -> (i32, i32) {
    %c0_i32 = arith.constant 0 : i32
    %c0_i32_0 = arith.constant 0 : i32
    %c0_i32_1 = arith.constant 0 : i32
    return %c0_i32, %c0_i32_0 : i32, i32
  }
  func.func @transform_3(%arg0: i32) -> (i32, i32) {
    %c0_i32 = arith.constant 0 : i32
    %c0_i32_0 = arith.constant 0 : i32
    return %arg0, %c0_i32 : i32, i32
  }
}

module attributes {stable_mosaic.version = 11 : i64} {
  func.func @_clip_ce_kernel(%arg0: i32, %arg1: i32, %arg2: memref<1xf32, #tpu.memory_space<smem>>, %arg3: memref<8x768xbf16, #tpu.memory_space<vmem>>, %arg4: memref<768x128xbf16, #tpu.memory_space<vmem>>, %arg5: memref<128x128xbf16, #tpu.memory_space<vmem>>, %arg6: memref<8x128xf32, #tpu.memory_space<vmem>>, %arg7: memref<8x1xf32, #tpu.memory_space<vmem>>, %arg8: memref<8x128xbf16, #tpu.memory_space<vmem>>, %arg9: memref<8x1xf32, #tpu.memory_space<vmem>>, %arg10: memref<8x1xf32, #tpu.memory_space<vmem>>, %arg11: memref<8x1xf32, #tpu.memory_space<vmem>>) attributes {dimension_semantics = [#tpu.dimension_semantics<parallel>, #tpu.dimension_semantics<arbitrary>], iteration_bounds = array<i64: 1, 1>, scalar_prefetch = 0 : i64, scratch_operands = 4 : i64, tpu.core_type = #tpu.core_type<tc>, window_params = [{transform_indices = @transform_0, window_bounds = array<i64: 1>}, {transform_indices = @transform_1, window_bounds = array<i64: 8, 768>}, {pipeline_mode = #tpu.pipeline_mode<synchronous>, transform_indices = @transform_2, window_bounds = array<i64: 768, 128>}, {transform_indices = @transform_3, window_bounds = array<i64: 128, 128>}, {transform_indices = @transform_4, window_bounds = array<i64: 8, 128>}, {transform_indices = @transform_5, window_bounds = array<i64: 8, 1>}]} {
    %c0_i32 = arith.constant 0 : i32
    %0 = arith.cmpi eq, %arg1, %c0_i32 : i32
    %1 = arith.extui %0 : i1 to i32
    %c0_i32_0 = arith.constant 0 : i32
    %2 = arith.cmpi ne, %1, %c0_i32_0 : i32
    scf.if %2 {
      %c0_19 = arith.constant 0 : index
      %c0_20 = arith.constant 0 : index
      %34 = vector.load %arg3[%c0_19, %c0_20] : memref<8x768xbf16, #tpu.memory_space<vmem>>, vector<8x768xbf16>
      %c0_21 = arith.constant 0 : index
      %c0_22 = arith.constant 0 : index
      %35 = vector.load %arg4[%c0_21, %c0_22] : memref<768x128xbf16, #tpu.memory_space<vmem>>, vector<768x128xbf16>
      %cst_23 = arith.constant dense<0.000000e+00> : vector<8x128xf32>
      %36 = tpu.matmul %34, %35, %cst_23 {dimension_numbers = #tpu.dot_dimension_numbers<[1], [0], [0], [1], [0, 0, 1, 1], [], []>} : vector<8x768xbf16>, vector<768x128xbf16>, vector<8x128xf32> -> vector<8x128xf32>
      %c0_24 = arith.constant 0 : index
      %37 = memref.load %arg2[%c0_24] : memref<1xf32, #tpu.memory_space<smem>>
      %38 = arith.mulf %36, %36 : vector<8x128xf32>
      %cst_25 = arith.constant dense<0.000000e+00> : vector<8xf32>
      %39 = vector.multi_reduction <add>, %38, %cst_25 [1] : vector<8x128xf32> to vector<8xf32>
      %40 = vector.shape_cast %39 : vector<8xf32> to vector<8x1xf32>
      %cst_26 = arith.constant 9.99999996E-13 : f32
      %41 = vector.broadcast %cst_26 : f32 to vector<8x1xf32>
      %42 = arith.addf %40, %41 : vector<8x1xf32>
      %43 = math.rsqrt %42 : vector<8x1xf32>
      %44 = vector.broadcast %37 : f32 to vector<8x1xf32>
      %45 = arith.mulf %44, %43 : vector<8x1xf32>
      %46 = vector.broadcast %45 : vector<8x1xf32> to vector<8x128xf32>
      %47 = arith.mulf %36, %46 : vector<8x128xf32>
      %c0_27 = arith.constant 0 : index
      %c0_28 = arith.constant 0 : index
      %48 = vector.load %arg6[%c0_27, %c0_28] : memref<8x128xf32, #tpu.memory_space<vmem>>, vector<8x128xf32>
      %49 = arith.mulf %47, %48 : vector<8x128xf32>
      %cst_29 = arith.constant dense<0.000000e+00> : vector<8xf32>
      %50 = vector.multi_reduction <add>, %49, %cst_29 [1] : vector<8x128xf32> to vector<8xf32>
      %51 = vector.shape_cast %50 : vector<8xf32> to vector<8x1xf32>
      %c0_30 = arith.constant 0 : index
      %c0_31 = arith.constant 0 : index
      %52 = vector.load %arg11[%c0_30, %c0_31] : memref<8x1xf32, #tpu.memory_space<vmem>>, vector<8x1xf32>
      tpu.vector_store %arg11[%c0_30, %c0_31], %51 {strides = array<i32>} : memref<8x1xf32, #tpu.memory_space<vmem>>, vector<8x1xf32>,
      %53 = arith.truncf %47 : vector<8x128xf32> to vector<8x128xbf16>
      %c0_32 = arith.constant 0 : index
      %c0_33 = arith.constant 0 : index
      %54 = vector.load %arg8[%c0_32, %c0_33] : memref<8x128xbf16, #tpu.memory_space<vmem>>, vector<8x128xbf16>
      tpu.vector_store %arg8[%c0_32, %c0_33], %53 {strides = array<i32>} : memref<8x128xbf16, #tpu.memory_space<vmem>>, vector<8x128xbf16>,
      %cst_34 = arith.constant -1.000000e+30 : f32
      %55 = vector.broadcast %cst_34 : f32 to vector<8x1xf32>
      %c0_35 = arith.constant 0 : index
      %c0_36 = arith.constant 0 : index
      %56 = vector.load %arg9[%c0_35, %c0_36] : memref<8x1xf32, #tpu.memory_space<vmem>>, vector<8x1xf32>
      tpu.vector_store %arg9[%c0_35, %c0_36], %55 {strides = array<i32>} : memref<8x1xf32, #tpu.memory_space<vmem>>, vector<8x1xf32>,
      %cst_37 = arith.constant 0.000000e+00 : f32
      %57 = vector.broadcast %cst_37 : f32 to vector<8x1xf32>
      %c0_38 = arith.constant 0 : index
      %c0_39 = arith.constant 0 : index
      %58 = vector.load %arg10[%c0_38, %c0_39] : memref<8x1xf32, #tpu.memory_space<vmem>>, vector<8x1xf32>
      tpu.vector_store %arg10[%c0_38, %c0_39], %57 {strides = array<i32>} : memref<8x1xf32, #tpu.memory_space<vmem>>, vector<8x1xf32>,
    } else {
    }
    %c0 = arith.constant 0 : index
    %c0_1 = arith.constant 0 : index
    %3 = vector.load %arg8[%c0, %c0_1] : memref<8x128xbf16, #tpu.memory_space<vmem>>, vector<8x128xbf16>
    %c0_2 = arith.constant 0 : index
    %c0_3 = arith.constant 0 : index
    %4 = vector.load %arg5[%c0_2, %c0_3] : memref<128x128xbf16, #tpu.memory_space<vmem>>, vector<128x128xbf16>
    %cst = arith.constant dense<0.000000e+00> : vector<8x128xf32>
    %5 = tpu.matmul %3, %4, %cst {dimension_numbers = #tpu.dot_dimension_numbers<[1], [0], [0], [1], [0, 0, 1, 1], [], []>} : vector<8x128xbf16>, vector<128x128xbf16>, vector<8x128xf32> -> vector<8x128xf32>
    %c128_i32 = arith.constant 128 : i32
    %6 = arith.muli %arg1, %c128_i32 : i32
    %7 = tpu.iota {dimensions = array<i32: 1>} : vector<8x128xi32>
    %8 = vector.broadcast %6 : i32 to vector<8x128xi32>
    %9 = arith.addi %8, %7 : vector<8x128xi32>
    %c16_i32 = arith.constant 16 : i32
    %10 = vector.broadcast %c16_i32 : i32 to vector<8x128xi32>
    %11 = arith.cmpi slt, %9, %10 : vector<8x128xi32>
    %cst_4 = arith.constant -1.000000e+30 : f32
    %12 = vector.broadcast %cst_4 : f32 to vector<8x128xf32>
    %13 = arith.select %11, %5, %12 : vector<8x128xi1>, vector<8x128xf32>
    %c0_5 = arith.constant 0 : index
    %c0_6 = arith.constant 0 : index
    %14 = vector.load %arg9[%c0_5, %c0_6] : memref<8x1xf32, #tpu.memory_space<vmem>>, vector<8x1xf32>
    %cst_7 = arith.constant dense<0xFF800000> : vector<8xf32>
    %15 = vector.multi_reduction <maximumf>, %13, %cst_7 [1] : vector<8x128xf32> to vector<8xf32>
    %16 = vector.shape_cast %15 : vector<8xf32> to vector<8x1xf32>
    %17 = arith.maximumf %14, %16 : vector<8x1xf32>
    %c0_8 = arith.constant 0 : index
    %c0_9 = arith.constant 0 : index
    %18 = vector.load %arg9[%c0_8, %c0_9] : memref<8x1xf32, #tpu.memory_space<vmem>>, vector<8x1xf32>
    %19 = arith.subf %18, %17 : vector<8x1xf32>
    %20 = math.exp %19 : vector<8x1xf32>
    %c0_10 = arith.constant 0 : index
    %c0_11 = arith.constant 0 : index
    %21 = vector.load %arg10[%c0_10, %c0_11] : memref<8x1xf32, #tpu.memory_space<vmem>>, vector<8x1xf32>
    %22 = arith.mulf %20, %21 : vector<8x1xf32>
    %23 = vector.broadcast %17 : vector<8x1xf32> to vector<8x128xf32>
    %24 = arith.subf %13, %23 : vector<8x128xf32>
    %25 = math.exp %24 : vector<8x128xf32>
    %cst_12 = arith.constant dense<0.000000e+00> : vector<8xf32>
    %26 = vector.multi_reduction <add>, %25, %cst_12 [1] : vector<8x128xf32> to vector<8xf32>
    %27 = vector.shape_cast %26 : vector<8xf32> to vector<8x1xf32>
    %28 = arith.addf %22, %27 : vector<8x1xf32>
    %c0_13 = arith.constant 0 : index
    %c0_14 = arith.constant 0 : index
    %29 = vector.load %arg10[%c0_13, %c0_14] : memref<8x1xf32, #tpu.memory_space<vmem>>, vector<8x1xf32>
    tpu.vector_store %arg10[%c0_13, %c0_14], %28 {strides = array<i32>} : memref<8x1xf32, #tpu.memory_space<vmem>>, vector<8x1xf32>,
    %c0_15 = arith.constant 0 : index
    %c0_16 = arith.constant 0 : index
    %30 = vector.load %arg9[%c0_15, %c0_16] : memref<8x1xf32, #tpu.memory_space<vmem>>, vector<8x1xf32>
    tpu.vector_store %arg9[%c0_15, %c0_16], %17 {strides = array<i32>} : memref<8x1xf32, #tpu.memory_space<vmem>>, vector<8x1xf32>,
    %c0_i32_17 = arith.constant 0 : i32
    %31 = arith.cmpi eq, %arg1, %c0_i32_17 : i32
    %32 = arith.extui %31 : i1 to i32
    %c0_i32_18 = arith.constant 0 : i32
    %33 = arith.cmpi ne, %32, %c0_i32_18 : i32
    scf.if %33 {
      %c0_19 = arith.constant 0 : index
      %c0_20 = arith.constant 0 : index
      %34 = vector.load %arg10[%c0_19, %c0_20] : memref<8x1xf32, #tpu.memory_space<vmem>>, vector<8x1xf32>
      %35 = math.log %34 : vector<8x1xf32>
      %c0_21 = arith.constant 0 : index
      %c0_22 = arith.constant 0 : index
      %36 = vector.load %arg9[%c0_21, %c0_22] : memref<8x1xf32, #tpu.memory_space<vmem>>, vector<8x1xf32>
      %37 = arith.addf %35, %36 : vector<8x1xf32>
      %c0_23 = arith.constant 0 : index
      %c0_24 = arith.constant 0 : index
      %38 = vector.load %arg11[%c0_23, %c0_24] : memref<8x1xf32, #tpu.memory_space<vmem>>, vector<8x1xf32>
      %39 = arith.subf %37, %38 : vector<8x1xf32>
      %c0_25 = arith.constant 0 : index
      %c0_26 = arith.constant 0 : index
      %40 = vector.load %arg7[%c0_25, %c0_26] : memref<8x1xf32, #tpu.memory_space<vmem>>, vector<8x1xf32>
      tpu.vector_store %arg7[%c0_25, %c0_26], %39 {strides = array<i32>} : memref<8x1xf32, #tpu.memory_space<vmem>>, vector<8x1xf32>,
    } else {
    }
    return
  }
  func.func @transform_0(%arg0: i32, %arg1: i32) -> i32 {
    %c0_i32 = arith.constant 0 : i32
    %c0_i32_0 = arith.constant 0 : i32
    return %c0_i32 : i32
  }
  func.func @transform_1(%arg0: i32, %arg1: i32) -> (i32, i32) {
    %c0_i32 = arith.constant 0 : i32
    %c0_i32_0 = arith.constant 0 : i32
    return %arg0, %c0_i32 : i32, i32
  }
  func.func @transform_2(%arg0: i32, %arg1: i32) -> (i32, i32) {
    %c0_i32 = arith.constant 0 : i32
    %c0_i32_0 = arith.constant 0 : i32
    %c0_i32_1 = arith.constant 0 : i32
    return %c0_i32, %c0_i32_0 : i32, i32
  }
  func.func @transform_3(%arg0: i32, %arg1: i32) -> (i32, i32) {
    %c0_i32 = arith.constant 0 : i32
    %c0_i32_0 = arith.constant 0 : i32
    return %c0_i32, %arg1 : i32, i32
  }
  func.func @transform_4(%arg0: i32, %arg1: i32) -> (i32, i32) {
    %c0_i32 = arith.constant 0 : i32
    %c0_i32_0 = arith.constant 0 : i32
    return %arg0, %c0_i32 : i32, i32
  }
  func.func @transform_5(%arg0: i32, %arg1: i32) -> (i32, i32) {
    %c0_i32 = arith.constant 0 : i32
    %c0_i32_0 = arith.constant 0 : i32
    return %arg0, %c0_i32 : i32, i32
  }
}

</mosaic_0001>

<bundles_post_ra>
// kernel: semi_penalty_forward.2
= control target key start
LH: loop header
LB: loop body
LE: loop exit
PB: predicated region body
PF: predicated region fallthrough
CT: control target
= control target key end

     0   :  { %s981_s1 = inlined_call_operand.vmem [shape: bf16[128,128], index: 1, kind: input, shape index: {}]   ;;  %s982_s0 = inlined_call_operand.vmem [shape: bf16[128,128], index: 0, kind: input, shape index: {}]   ;;  %s983_s2 = inlined_call_operand.vmem [shape: bf16[128,128], index: 2, kind: input, shape index: {}]   ;;  %s984_s3 = inlined_call_operand.vmem [shape: f32[128,128], index: 3, kind: output, shape index: {}]  }
   0x1   :  { %v699_v0 = vld [vmem:[%s981_s1 + $0x38] sm:$0xff]  ;;  %v698_v1 = vld [vmem:[%s981_s1 + $0x30] sm:$0xff]  ;;  %v697_v2 = vld [vmem:[%s981_s1 + $0x28] sm:$0xff] }
   0x2   :  { %142 = vmatpush.bf16.msra.mxu0 %v699_v0  ;;  %708 = vmatpush.bf16.msra.mxu2 %v699_v0  ;;  %v696_v3 = vld [vmem:[%s981_s1 + $0x20] sm:$0xff]  ;;  %v695_v4 = vld [vmem:[%s981_s1 + $0x18] sm:$0xff]  ;;  %v694_v5 = vld [vmem:[%s981_s1 + $0x10] sm:$0xff] }
   0x3   :  { %v693_v6 = vld [vmem:[%s981_s1 + $0x8] sm:$0xff]  ;;  %v692_v7 = vld [vmem:[%s981_s1] sm:$0xff]  ;;  %v707_v12 = vld [vmem:[%s983_s2 + $0x38] sm:$0xff] }
   0x4   :  { %v684_v8 = vld [vmem:[%s982_s0] sm:$0xff]  ;;  %v685_v10 = vld [vmem:[%s982_s0 + $0x8] sm:$0xff]  ;;  %279 = vmatpush.bf16.msra.mxu1 %v707_v12  ;;  %v706_v13 = vld [vmem:[%s983_s2 + $0x30] sm:$0xff]  ;;  %716 = vmatpush.bf16.msra.mxu3 %v707_v12 }
   0x5   :  { %v688_v9 = vld [vmem:[%s982_s0 + $0x20] sm:$0xff]  ;;  %v689_v11 = vld [vmem:[%s982_s0 + $0x28] sm:$0xff]  ;;  %v686_v16 = vld [vmem:[%s982_s0 + $0x10] sm:$0xff] }
   0x6   :  { %143 = vmatpush.bf16.msra.mxu0 %v698_v1  ;;  %709 = vmatpush.bf16.msra.mxu2 %v698_v1  ;;  %v705_v14 = vld [vmem:[%s983_s2 + $0x28] sm:$0xff]  ;;  %v704_v15 = vld [vmem:[%s983_s2 + $0x20] sm:$0xff]  ;;  %v690_v17 = vld [vmem:[%s982_s0 + $0x30] sm:$0xff] }
   0x7   :  { %v703_v18 = vld [vmem:[%s983_s2 + $0x18] sm:$0xff]  ;;  %v702_v21 = vld [vmem:[%s983_s2 + $0x10] sm:$0xff]  ;;  %v701_v22 = vld [vmem:[%s983_s2 + $0x8] sm:$0xff] }
   0x8   :  { %280 = vmatpush.bf16.msra.mxu1 %v706_v13  ;;  %717 = vmatpush.bf16.msra.mxu3 %v706_v13  ;;  %v687_v19 = vld [vmem:[%s982_s0 + $0x18] sm:$0xff]  ;;  %v700_v23 = vld [vmem:[%s983_s2] sm:$0xff] }
   0x9   :  { %v691_v20 = vld [vmem:[%s982_s0 + $0x38] sm:$0xff] }
   0xa   :  { %144 = vmatpush.bf16.msra.mxu0 %v697_v2  ;;  %710 = vmatpush.bf16.msra.mxu2 %v697_v2 }
   0xc   :  { %281 = vmatpush.bf16.msra.mxu1 %v705_v14  ;;  %718 = vmatpush.bf16.msra.mxu3 %v705_v14 }
   0xe   :  { %145 = vmatpush.bf16.msra.mxu0 %v696_v3  ;;  %711 = vmatpush.bf16.msra.mxu2 %v696_v3 }
  0x10   :  { %282 = vmatpush.bf16.msra.mxu1 %v704_v15  ;;  %719 = vmatpush.bf16.msra.mxu3 %v704_v15 }
  0x12   :  { %146 = vmatpush.bf16.msra.mxu0 %v695_v4  ;;  %712 = vmatpush.bf16.msra.mxu2 %v695_v4 }
  0x14   :  { %283 = vmatpush.bf16.msra.mxu1 %v703_v18  ;;  %720 = vmatpush.bf16.msra.mxu3 %v703_v18 }
  0x16   :  { %147 = vmatpush.bf16.msra.mxu0 %v694_v5  ;;  %713 = vmatpush.bf16.msra.mxu2 %v694_v5 }
  0x18   :  { %284 = vmatpush.bf16.msra.mxu1 %v702_v21  ;;  %721 = vmatpush.bf16.msra.mxu3 %v702_v21 }
  0x1a   :  { %148 = vmatpush.bf16.msra.mxu0 %v693_v6  ;;  %714 = vmatpush.bf16.msra.mxu2 %v693_v6 }
  0x1c   :  { %285 = vmatpush.bf16.msra.mxu1 %v701_v22  ;;  %722 = vmatpush.bf16.msra.mxu3 %v701_v22 }
  0x1e   :  { %149 = vmatpush.bf16.msra.mxu0 %v692_v7  ;;  %715 = vmatpush.bf16.msra.mxu2 %v692_v7 }
  0x20   :  { %286 = vmatpush.bf16.msra.mxu1 %v700_v23  ;;  %723 = vmatpush.bf16.msra.mxu3 %v700_v23 }
  0x21   :  { %150 = vmatmul.bf16.vlgmr.msra.gmra.mxu0 %v684_v8  ;;  %170 = vmatmul.bf16.vlgmr.msra.gmra.mxu2 %v688_v9 }
  0x31   :  { %155 = vmatmul.bf16.gmra.mxu0 %v685_v10  ;;  %175 = vmatmul.bf16.gmra.mxu2 %v689_v11 }
  0x41   :  { %160 = vmatmul.bf16.gmra.mxu0 %v686_v16  ;;  %180 = vmatmul.bf16.gmra.mxu2 %v690_v17 }
  0x51   :  { %165 = vmatmul.bf16.gmra.mxu0 %v687_v19  ;;  %185 = vmatmul.bf16.gmra.mxu2 %v691_v20 }
  0x9e   :  { %v151_v24 = vpop.f32.mrf.mxu0 }
  0x9f   :  { %v191_v27 = vmax.f32 %v151_v24, 0.0 }
  0xa4   :  { %v171_v25 = vpop.f32.mrf.mxu2 }
  0xa5   :  { %v199_v31 = vmax.f32 %v171_v25, 0.0 }
  0xa6   :  { %v153_v26 = vpop.f32.mrf.mxu0 }
  0xa7   :  { %v192_v28 = vmax.f32 %v153_v26, 0.0 }
  0xa9   :  { %v207_v29 = vpack.c.bf16 %v192_v28, %v191_v27 }
  0xab   :  { %287 = vmatmul.bf16.vlgmr.msra.gmra.mxu1 %v207_v29 }
  0xac   :  { %v173_v30 = vpop.f32.mrf.mxu2 }
  0xad   :  { %v200_v32 = vmax.f32 %v173_v30, 0.0 }
  0xae   :  { %v156_v33 = vpop.f32.mrf.mxu0 }
  0xaf   :  { %v211_v34 = vpack.c.bf16 %v200_v32, %v199_v31  ;;  %v193_v37 = vmax.f32 %v156_v33, 0.0 }
  0xb1   :  { %307 = vmatmul.bf16.vlgmr.msra.gmra.mxu3 %v211_v34 }
  0xb4   :  { %v176_v35 = vpop.f32.mrf.mxu2 }
  0xb5   :  { %v201_v41 = vmax.f32 %v176_v35, 0.0 }
  0xb6   :  { %v158_v36 = vpop.f32.mrf.mxu0 }
  0xb7   :  { %v194_v38 = vmax.f32 %v158_v36, 0.0 }
  0xb9   :  { %v208_v39 = vpack.c.bf16 %v194_v38, %v193_v37 }
  0xbb   :  { %292 = vmatmul.bf16.gmra.mxu1 %v208_v39 }
  0xbc   :  { %v178_v40 = vpop.f32.mrf.mxu2 }
  0xbd   :  { %v202_v42 = vmax.f32 %v178_v40, 0.0 }
  0xbe   :  { %v161_v43 = vpop.f32.mrf.mxu0 }
  0xbf   :  { %v212_v44 = vpack.c.bf16 %v202_v42, %v201_v41  ;;  %v195_v47 = vmax.f32 %v161_v43, 0.0 }
  0xc1   :  { %312 = vmatmul.bf16.gmra.mxu3 %v212_v44 }
  0xc4   :  { %v181_v45 = vpop.f32.mrf.mxu2 }
  0xc5   :  { %v203_v51 = vmax.f32 %v181_v45, 0.0 }
  0xc6   :  { %v163_v46 = vpop.f32.mrf.mxu0 }
  0xc7   :  { %v196_v48 = vmax.f32 %v163_v46, 0.0 }
  0xc9   :  { %v209_v49 = vpack.c.bf16 %v196_v48, %v195_v47 }
  0xcb   :  { %297 = vmatmul.bf16.gmra.mxu1 %v209_v49 }
  0xcc   :  { %v183_v50 = vpop.f32.mrf.mxu2 }
  0xcd   :  { %v204_v52 = vmax.f32 %v183_v50, 0.0 }
  0xce   :  { %v166_v53 = vpop.f32.mrf.mxu0 }
  0xcf   :  { %v213_v54 = vpack.c.bf16 %v204_v52, %v203_v51  ;;  %v197_v57 = vmax.f32 %v166_v53, 0.0 }
  0xd1   :  { %317 = vmatmul.bf16.gmra.mxu3 %v213_v54 }
  0xd4   :  { %v186_v55 = vpop.f32.mrf.mxu2 }
  0xd5   :  { %v205_v61 = vmax.f32 %v186_v55, 0.0 }
  0xd6   :  { %v168_v56 = vpop.f32.mrf.mxu0 }
  0xd7   :  { %v198_v58 = vmax.f32 %v168_v56, 0.0 }
  0xd9   :  { %v210_v59 = vpack.c.bf16 %v198_v58, %v197_v57 }
  0xdb   :  { %302 = vmatmul.bf16.gmra.mxu1 %v210_v59 }
  0xdc   :  { %v188_v60 = vpop.f32.mrf.mxu2 }
  0xdd   :  { %v206_v62 = vmax.f32 %v188_v60, 0.0 }
  0xdf   :  { %v214_v63 = vpack.c.bf16 %v206_v62, %v205_v61 }
  0xe1   :  { %322 = vmatmul.bf16.gmra.mxu3 %v214_v63 }
 0x128   :  { %v848_v0 = vpop.f32.mrf.mxu1 }
 0x129   :  { %v328_v1 = vmul.f32 %v848_v0, %v848_v0 }
 0x12b   :  { %344 = vadd.xlane.f32.xlu0 %v328_v1 }
 0x130   :  { %v852_v2 = vpop.f32.mrf.mxu1 }
 0x131   :  { %v329_v3 = vmul.f32 %v852_v2, %v852_v2 }
 0x133   :  { %346 = vadd.xlane.f32.xlu0 %v329_v3 }
 0x134   :  { %v856_v4 = vpop.f32.mrf.mxu3 }
 0x135   :  { %v336_v5 = vmul.f32 %v856_v4, %v856_v4 }
 0x137   :  { %360 = vadd.xlane.f32.xlu2 %v336_v5 }
 0x138   :  { %v860_v6 = vpop.f32.mrf.mxu1 }
 0x139   :  { %v330_v7 = vmul.f32 %v860_v6, %v860_v6 }
 0x13b   :  { %348 = vadd.xlane.f32.xlu1 %v330_v7 }
 0x13c   :  { %v864_v8 = vpop.f32.mrf.mxu3 }
 0x13d   :  { %v337_v9 = vmul.f32 %v864_v8, %v864_v8 }
 0x13f   :  { %362 = vadd.xlane.f32.xlu0 %v337_v9 }
 0x140   :  { %v868_v10 = vpop.f32.mrf.mxu1 }
 0x141   :  { %v331_v11 = vmul.f32 %v868_v10, %v868_v10 }
 0x143   :  { %350 = vadd.xlane.f32.xlu1 %v331_v11 }
 0x144   :  { %v872_v12 = vpop.f32.mrf.mxu3 }
 0x145   :  { %v338_v14 = vmul.f32 %v872_v12, %v872_v12 }
 0x148   :  { %v874_v13 = vpop.f32.mrf.mxu1 }
 0x149   :  { %v332_v15 = vmul.f32 %v874_v13, %v874_v13 }
 0x14b   :  { %364 = vadd.xlane.f32.xlu1 %v338_v14  ;;  %352 = vadd.xlane.f32.xlu2 %v332_v15 }
 0x14c   :  { %v880_v16 = vpop.f32.mrf.mxu3 }
 0x14d   :  { %v339_v18 = vmul.f32 %v880_v16, %v880_v16 }
 0x150   :  { %v882_v17 = vpop.f32.mrf.mxu1 }
 0x151   :  { %v333_v22 = vmul.f32 %v882_v17, %v882_v17 }
 0x153   :  { %366 = vadd.xlane.f32.xlu2 %v339_v18 }
 0x154   :  { %v886_v19 = vpop.f32.mrf.mxu3 }
 0x155   :  { %v340_v20 = vmul.f32 %v886_v19, %v886_v19 }
 0x157   :  { %368 = vadd.xlane.f32.xlu0 %v340_v20 }
 0x158   :  { %v890_v21 = vpop.f32.mrf.mxu1 }
 0x159   :  { %v334_v24 = vmul.f32 %v890_v21, %v890_v21 }
 0x15b   :  { %354 = vadd.xlane.f32.xlu2 %v333_v22 }
 0x15c   :  { %v894_v23 = vpop.f32.mrf.mxu3 }
 0x15d   :  { %v341_v29 = vmul.f32 %v894_v23, %v894_v23 }
 0x15f   :  { %356 = vadd.xlane.f32.xlu0 %v334_v24 }
 0x160   :  { %v898_v25 = vpop.f32.mrf.mxu1 }
 0x161   :  { %v335_v26 = vmul.f32 %v898_v25, %v898_v25 }
 0x163   :  { %358 = vadd.xlane.f32.xlu1 %v335_v26 }
 0x164   :  { %v902_v27 = vpop.f32.mrf.mxu3 }
 0x165   :  { %v342_v28 = vmul.f32 %v902_v27, %v902_v27 }
 0x167   :  { %372 = vadd.xlane.f32.xlu2 %v342_v28 }
 0x16b   :  { %370 = vadd.xlane.f32.xlu1 %v341_v29 }
 0x16c   :  { %v908_v30 = vpop.f32.mrf.mxu3 }
 0x16d   :  { %v343_v31 = vmul.f32 %v908_v30, %v908_v30 }
 0x16f   :  { %374 = vadd.xlane.f32.xlu0 %v343_v31 }
 0x19e   :  { %v345_v32 = vpop.xlane.xlu0 %344 }
 0x19f   :  { %v376_v33 = vadd.f32 1e-12, %v345_v32 }
 0x1a1   :  { %724 = vrsqrt.f32 %v376_v33  ;;  %vm398_vm1 = vweird.f32 %v376_v33 }
 0x1a6   :  { %v347_v34 = vpop.xlane.xlu0 %346 }
 0x1a7   :  { %v725_v35 = vpop.eup %724  ;;  %v377_v36 = vadd.f32 1e-12, %v347_v34 }
 0x1a8   :  { %v393_v37 = vmul.f32 %v725_v35, %v376_v33  ;;  %vm399_vm0 = vweird.f32 %v725_v35 }
 0x1a9   :  { %726 = vrsqrt.f32 %v377_v36  ;;  %vm400_vm2 = vmor %vm398_vm1, %vm399_vm0  ;;  %vm408_vm4 = vweird.f32 %v377_v36 }
 0x1aa   :  { %v394_v38 = vmul.f32 %v725_v35, %v393_v37  ;;  %v361_v39 = vpop.xlane.xlu2 %360 }
 0x1ab   :  { %v384_v40 = vadd.f32 1e-12, %v361_v39 }
 0x1ac   :  { %v395_v41 = vmul.f32 0.5, %v394_v38 }
 0x1ad   :  { %728 = vrsqrt.f32 %v384_v40  ;;  %vm478_vm7 = vweird.f32 %v384_v40 }
 0x1ae   :  { %v396_v42 = vsub.f32 1.5, %v395_v41  ;;  %v349_v43 = vpop.xlane.xlu1 %348 }
 0x1af   :  { %v727_v44 = vpop.eup %726  ;;  %v378_v45 = vadd.f32 1e-12, %v349_v43 }
 0x1b0   :  { %v397_v46 = vmul.f32 %v725_v35, %v396_v42  ;;  %v403_v47 = vmul.f32 %v727_v44, %v377_v36  ;;  %vm409_vm3 = vweird.f32 %v727_v44 }
 0x1b1   :  { %730 = vrsqrt.f32 %v378_v45  ;;  %vm410_vm5 = vmor %vm408_vm4, %vm409_vm3  ;;  %vm418_vm10 = vweird.f32 %v378_v45 }
 0x1b2   :  { %v401_v48 = vsel %vm400_vm2, %v725_v35, %v397_v46  ;;  %v404_v49 = vmul.f32 %v727_v44, %v403_v47  ;;  %v363_v50 = vpop.xlane.xlu0 %362 }
 0x1b3   :  { %v729_v51 = vpop.eup %728  ;;  %v552_v52 = vmul.f32 %v401_v48, %v848_v0  ;;  %v385_v53 = vadd.f32 1e-12, %v363_v50 }
 0x1b4   :  { %v405_v54 = vmul.f32 0.5, %v404_v49  ;;  %v473_v55 = vmul.f32 %v729_v51, %v384_v40  ;;  %vm479_vm6 = vweird.f32 %v729_v51 }
 0x1b5   :  { %568 = vst [vmem:[%s984_s3] sm:$0xff] %v552_v52  ;;  %732 = vrsqrt.f32 %v385_v53  ;;  %vm480_vm8 = vmor %vm478_vm7, %vm479_vm6  ;;  %vm488_vm13 = vweird.f32 %v385_v53 }
 0x1b6   :  { %v406_v56 = vsub.f32 1.5, %v405_v54  ;;  %v474_v57 = vmul.f32 %v729_v51, %v473_v55  ;;  %v351_v58 = vpop.xlane.xlu1 %350 }
 0x1b7   :  { %v731_v59 = vpop.eup %730  ;;  %v379_v60 = vadd.f32 1e-12, %v351_v58 }
 0x1b8   :  { %v407_v61 = vmul.f32 %v727_v44, %v406_v56  ;;  %v475_v62 = vmul.f32 0.5, %v474_v57  ;;  %v413_v63 = vmul.f32 %v731_v59, %v378_v45  ;;  %vm419_vm9 = vweird.f32 %v731_v59 }
 0x1b9   :  { %734 = vrsqrt.f32 %v379_v60  ;;  %vm420_vm11 = vmor %vm418_vm10, %vm419_vm9  ;;  %vm428_vm0 = vweird.f32 %v379_v60 }
 0x1ba   :  { %v411_v0 = vsel %vm410_vm5, %v727_v44, %v407_v61  ;;  %v476_v1 = vsub.f32 1.5, %v475_v62  ;;  %v414_v3 = vmul.f32 %v731_v59, %v413_v63 }
 0x1bb   :  { %v733_v5 = vpop.eup %732  ;;  %v553_v7 = vmul.f32 %v411_v0, %v852_v2 }
 0x1bc   :  { %v477_v9 = vmul.f32 %v729_v51, %v476_v1  ;;  %v415_v11 = vmul.f32 0.5, %v414_v3  ;;  %v483_v14 = vmul.f32 %v733_v5, %v385_v53  ;;  %vm489_vm12 = vweird.f32 %v733_v5 }
 0x1bd   :  { %569 = vst [vmem:[%s984_s3 + $0x8] sm:$0xff] %v553_v7  ;;  %vm490_vm14 = vmor %vm488_vm13, %vm489_vm12 }
 0x1be   :  { %v481_v15 = vsel %vm480_vm8, %v729_v51, %v477_v9  ;;  %v416_v18 = vsub.f32 1.5, %v415_v11  ;;  %v484_v20 = vmul.f32 %v733_v5, %v483_v14  ;;  %v365_v22 = vpop.xlane.xlu1 %364  ;;  %v353_v24 = vpop.xlane.xlu2 %352 }
 0x1bf   :  { %v735_v26 = vpop.eup %734  ;;  %v560_v28 = vmul.f32 %v481_v15, %v856_v4  ;;  %v386_v29 = vadd.f32 1e-12, %v365_v22  ;;  %v380_v2 = vadd.f32 1e-12, %v353_v24 }
 0x1c0   :  { %v417_v31 = vmul.f32 %v731_v59, %v416_v18  ;;  %v485_v32 = vmul.f32 0.5, %v484_v20  ;;  %v423_v33 = vmul.f32 %v735_v26, %v379_v60  ;;  %vm429_vm15 = vweird.f32 %v735_v26 }
 0x1c1   :  { %576 = vst [vmem:[%s984_s3 + $0x40] sm:$0xff] %v560_v28  ;;  %736 = vrsqrt.f32 %v386_v29  ;;  %vm430_vm1 = vmor %vm428_vm0, %vm429_vm15  ;;  %vm498_vm4 = vweird.f32 %v386_v29  ;;  %vm438_vm6 = vweird.f32 %v380_v2 }
 0x1c2   :  { %v421_v34 = vsel %vm420_vm11, %v731_v59, %v417_v31  ;;  %v486_v35 = vsub.f32 1.5, %v485_v32  ;;  %v424_v36 = vmul.f32 %v735_v26, %v423_v33  ;;  %738 = vrsqrt.f32 %v380_v2 }
 0x1c3   :  { %v554_v37 = vmul.f32 %v421_v34, %v860_v6 }
 0x1c4   :  { %v487_v4 = vmul.f32 %v733_v5, %v486_v35  ;;  %v425_v38 = vmul.f32 0.5, %v424_v36 }
 0x1c5   :  { %570 = vst [vmem:[%s984_s3 + $0x10] sm:$0xff] %v554_v37 }
 0x1c6   :  { %v491_v39 = vsel %vm490_vm14, %v733_v5, %v487_v4  ;;  %v426_v40 = vsub.f32 1.5, %v425_v38  ;;  %v367_v41 = vpop.xlane.xlu2 %366 }
 0x1c7   :  { %v737_v42 = vpop.eup %736  ;;  %v561_v43 = vmul.f32 %v491_v39, %v864_v8  ;;  %v387_v44 = vadd.f32 1e-12, %v367_v41 }
 0x1c8   :  { %v739_v45 = vpop.eup %738  ;;  %v427_v46 = vmul.f32 %v735_v26, %v426_v40  ;;  %v493_v6 = vmul.f32 %v737_v42, %v386_v29  ;;  %vm499_vm2 = vweird.f32 %v737_v42 }
 0x1c9   :  { %577 = vst [vmem:[%s984_s3 + $0x48] sm:$0xff] %v561_v43  ;;  %v433_v47 = vmul.f32 %v739_v45, %v380_v2  ;;  %740 = vrsqrt.f32 %v387_v44  ;;  %vm439_vm3 = vweird.f32 %v739_v45  ;;  %vm500_vm5 = vmor %vm498_vm4, %vm499_vm2  ;;  %vm508_vm9 = vweird.f32 %v387_v44 }
 0x1ca   :  { %v431_v48 = vsel %vm430_vm1, %v735_v26, %v427_v46  ;;  %v494_v49 = vmul.f32 %v737_v42, %v493_v6  ;;  %v369_v50 = vpop.xlane.xlu0 %368  ;;  %vm440_vm7 = vmor %vm438_vm6, %vm439_vm3 }
 0x1cb   :  { %v555_v51 = vmul.f32 %v431_v48, %v868_v10  ;;  %v434_v52 = vmul.f32 %v739_v45, %v433_v47  ;;  %v388_v53 = vadd.f32 1e-12, %v369_v50 }
 0x1cc   :  { %v495_v8 = vmul.f32 0.5, %v494_v49 }
 0x1cd   :  { %571 = vst [vmem:[%s984_s3 + $0x18] sm:$0xff] %v555_v51  ;;  %v435_v54 = vmul.f32 0.5, %v434_v52  ;;  %742 = vrsqrt.f32 %v388_v53  ;;  %vm518_vm12 = vweird.f32 %v388_v53 }
 0x1ce   :  { %v496_v55 = vsub.f32 1.5, %v495_v8  ;;  %v355_v56 = vpop.xlane.xlu2 %354 }
 0x1cf   :  { %v741_v57 = vpop.eup %740  ;;  %v436_v58 = vsub.f32 1.5, %v435_v54  ;;  %v381_v59 = vadd.f32 1e-12, %v355_v56 }
 0x1d0   :  { %v497_v60 = vmul.f32 %v737_v42, %v496_v55  ;;  %v503_v61 = vmul.f32 %v741_v57, %v387_v44  ;;  %vm509_vm8 = vweird.f32 %v741_v57 }
 0x1d1   :  { %v437_v10 = vmul.f32 %v739_v45, %v436_v58  ;;  %744 = vrsqrt.f32 %v381_v59  ;;  %vm510_vm10 = vmor %vm508_vm9, %vm509_vm8  ;;  %vm448_vm15 = vweird.f32 %v381_v59 }
 0x1d2   :  { %v501_v62 = vsel %vm500_vm5, %v737_v42, %v497_v60  ;;  %v504_v63 = vmul.f32 %v741_v57, %v503_v61  ;;  %v357_v0 = vpop.xlane.xlu0 %356 }
 0x1d3   :  { %v743_v1 = vpop.eup %742  ;;  %v562_v3 = vmul.f32 %v501_v62, %v872_v12  ;;  %v441_v5 = vsel %vm440_vm7, %v739_v45, %v437_v10  ;;  %v382_v7 = vadd.f32 1e-12, %v357_v0 }
 0x1d4   :  { %v556_v9 = vmul.f32 %v441_v5, %v874_v13  ;;  %v505_v11 = vmul.f32 0.5, %v504_v63  ;;  %v513_v14 = vmul.f32 %v743_v1, %v388_v53  ;;  %vm519_vm11 = vweird.f32 %v743_v1 }
 0x1d5   :  { %578 = vst [vmem:[%s984_s3 + $0x50] sm:$0xff] %v562_v3  ;;  %746 = vrsqrt.f32 %v382_v7  ;;  %vm520_vm13 = vmor %vm518_vm12, %vm519_vm11  ;;  %vm458_vm2 = vweird.f32 %v382_v7 }
 0x1d6   :  { %572 = vst [vmem:[%s984_s3 + $0x20] sm:$0xff] %v556_v9  ;;  %v506_v15 = vsub.f32 1.5, %v505_v11  ;;  %v514_v18 = vmul.f32 %v743_v1, %v513_v14  ;;  %v359_v20 = vpop.xlane.xlu1 %358 }
 0x1d7   :  { %v745_v12 = vpop.eup %744  ;;  %v944_v22 = vadd.f32 1e-12, %v359_v20 }
 0x1d8   :  { %v507_v24 = vmul.f32 %v741_v57, %v506_v15  ;;  %v515_v13 = vmul.f32 0.5, %v514_v18  ;;  %v443_v26 = vmul.f32 %v745_v12, %v381_v59  ;;  %vm449_vm14 = vweird.f32 %v745_v12 }
 0x1d9   :  { %748 = vrsqrt.f32 %v944_v22  ;;  %vm450_vm0 = vmor %vm448_vm15, %vm449_vm14  ;;  %vm468_vm5 = vweird.f32 %v944_v22 }
 0x1da   :  { %v511_v28 = vsel %vm510_vm10, %v741_v57, %v507_v24  ;;  %v516_v29 = vsub.f32 1.5, %v515_v13  ;;  %v444_v2 = vmul.f32 %v745_v12, %v443_v26  ;;  %v373_v31 = vpop.xlane.xlu2 %372 }
 0x1db   :  { %v747_v32 = vpop.eup %746  ;;  %v563_v33 = vmul.f32 %v511_v28, %v880_v16  ;;  %v390_v34 = vadd.f32 1e-12, %v373_v31 }
 0x1dc   :  { %v517_v35 = vmul.f32 %v743_v1, %v516_v29  ;;  %v445_v36 = vmul.f32 0.5, %v444_v2  ;;  %v453_v37 = vmul.f32 %v747_v32, %v382_v7  ;;  %vm459_vm1 = vweird.f32 %v747_v32 }
 0x1dd   :  { %579 = vst [vmem:[%s984_s3 + $0x58] sm:$0xff] %v563_v33  ;;  %750 = vrsqrt.f32 %v390_v34  ;;  %vm460_vm3 = vmor %vm458_vm2, %vm459_vm1  ;;  %vm538_vm8 = vweird.f32 %v390_v34 }
 0x1de   :  { %v521_v4 = vsel %vm520_vm13, %v743_v1, %v517_v35  ;;  %v446_v38 = vsub.f32 1.5, %v445_v36  ;;  %v454_v39 = vmul.f32 %v747_v32, %v453_v37  ;;  %v371_v40 = vpop.xlane.xlu1 %370 }
 0x1df   :  { %v749_v41 = vpop.eup %748  ;;  %v564_v42 = vmul.f32 %v521_v4, %v886_v19  ;;  %v389_v16 = vadd.f32 1e-12, %v371_v40 }
 0x1e0   :  { %v447_v43 = vmul.f32 %v745_v12, %v446_v38  ;;  %v455_v44 = vmul.f32 0.5, %v454_v39  ;;  %v463_v45 = vmul.f32 %v749_v41, %v944_v22  ;;  %vm469_vm4 = vweird.f32 %v749_v41 }
 0x1e1   :  { %580 = vst [vmem:[%s984_s3 + $0x60] sm:$0xff] %v564_v42  ;;  %752 = vrsqrt.f32 %v389_v16  ;;  %vm470_vm6 = vmor %vm468_vm5, %vm469_vm4  ;;  %vm528_vm11 = vweird.f32 %v389_v16 }
 0x1e2   :  { %v451_v46 = vsel %vm450_vm0, %v745_v12, %v447_v43  ;;  %v456_v6 = vsub.f32 1.5, %v455_v44  ;;  %v464_v47 = vmul.f32 %v749_v41, %v463_v45  ;;  %v375_v48 = vpop.xlane.xlu0 %374 }
 0x1e3   :  { %v751_v49 = vpop.eup %750  ;;  %v557_v19 = vmul.f32 %v451_v46, %v882_v17  ;;  %v391_v50 = vadd.f32 1e-12, %v375_v48 }
 0x1e4   :  { %v457_v51 = vmul.f32 %v747_v32, %v456_v6  ;;  %v465_v52 = vmul.f32 0.5, %v464_v47  ;;  %v533_v53 = vmul.f32 %v751_v49, %v390_v34  ;;  %vm539_vm7 = vweird.f32 %v751_v49 }
 0x1e5   :  { %573 = vst [vmem:[%s984_s3 + $0x28] sm:$0xff] %v557_v19  ;;  %754 = vrsqrt.f32 %v391_v50  ;;  %vm540_vm9 = vmor %vm538_vm8, %vm539_vm7  ;;  %vm548_vm14 = vweird.f32 %v391_v50 }
 0x1e6   :  { %v461_v8 = vsel %vm460_vm3, %v747_v32, %v457_v51  ;;  %v466_v54 = vsub.f32 1.5, %v465_v52  ;;  %v534_v55 = vmul.f32 %v751_v49, %v533_v53 }
 0x1e7   :  { %v753_v56 = vpop.eup %752  ;;  %v558_v57 = vmul.f32 %v461_v8, %v890_v21 }
 0x1e8   :  { %v467_v58 = vmul.f32 %v749_v41, %v466_v54  ;;  %v535_v17 = vmul.f32 0.5, %v534_v55  ;;  %v523_v59 = vmul.f32 %v753_v56, %v389_v16  ;;  %vm529_vm10 = vweird.f32 %v753_v56 }
 0x1e9   :  { %574 = vst [vmem:[%s984_s3 + $0x30] sm:$0xff] %v558_v57  ;;  %vm530_vm12 = vmor %vm528_vm11, %vm529_vm10 }
 0x1ea   :  { %v471_v60 = vsel %vm470_vm6, %v749_v41, %v467_v58  ;;  %v536_v61 = vsub.f32 1.5, %v535_v17  ;;  %v524_v10 = vmul.f32 %v753_v56, %v523_v59 }
 0x1eb   :  { %v755_v62 = vpop.eup %754  ;;  %v559_v63 = vmul.f32 %v471_v60, %v898_v25 }
 0x1ec   :  { %v537_v0 = vmul.f32 %v751_v49, %v536_v61  ;;  %v525_v21 = vmul.f32 0.5, %v524_v10  ;;  %v543_v1 = vmul.f32 %v755_v62, %v391_v50  ;;  %vm549_vm13 = vweird.f32 %v755_v62 }
 0x1ed   :  { %575 = vst [vmem:[%s984_s3 + $0x38] sm:$0xff] %v559_v63  ;;  %vm550_vm15 = vmor %vm548_vm14, %vm549_vm13 }
 0x1ee   :  { %v541_v3 = vsel %vm540_vm9, %v751_v49, %v537_v0  ;;  %v526_v5 = vsub.f32 1.5, %v525_v21  ;;  %v544_v7 = vmul.f32 %v755_v62, %v543_v1 }
 0x1ef   :  { %v566_v9 = vmul.f32 %v541_v3, %v902_v27 }
 0x1f0   :  { %v527_v11 = vmul.f32 %v753_v56, %v526_v5  ;;  %v545_v14 = vmul.f32 0.5, %v544_v7 }
 0x1f1   :  { %582 = vst [vmem:[%s984_s3 + $0x70] sm:$0xff] %v566_v9 }
 0x1f2   :  { %v531_v25 = vsel %vm530_vm12, %v753_v56, %v527_v11  ;;  %v546_v15 = vsub.f32 1.5, %v545_v14 }
 0x1f3   :  { %v565_v18 = vmul.f32 %v531_v25, %v894_v23 }
 0x1f4   :  { %v547_v20 = vmul.f32 %v755_v62, %v546_v15 }
 0x1f5   :  { %581 = vst [vmem:[%s984_s3 + $0x68] sm:$0xff] %v565_v18 }
 0x1f6   :  { %v551_v27 = vsel %vm550_vm15, %v755_v62, %v547_v20 }
 0x1f7   :  { %v567_v12 = vmul.f32 %v551_v27, %v908_v30 }
 0x1f9   :  { %583 = vst [vmem:[%s984_s3 + $0x78] sm:$0xff] %v567_v12 }

// kernel: semi_penalty_forward.3
= control target key start
LH: loop header
LB: loop body
LE: loop exit
PB: predicated region body
PF: predicated region fallthrough
CT: control target
= control target key end

     0   :  { %vm533_vm3 = vcmask 7168   ;;  %s1180_s2 = inlined_call_operand.vmem [shape: bf16[768,128], index: 2, kind: input, shape index: {}]   ;;  %s1181_s1 = inlined_call_operand.vmem [shape: bf16[8,768], index: 1, kind: input, shape index: {}]   ;;  %s1182_s3 = inlined_call_operand.vmem [shape: bf16[128,128], index: 3, kind: input, shape index: {}]   ;;  %s1183_s0 = inlined_call_operand.<no memory space> [shape: f32[1], index: 0, kind: input, shape index: {}]   ;;  %s1184_s4 = inlined_call_operand.vmem [shape: f32[8,128], index: 4, kind: input, shape index: {}]   ;;  %s1185_s5 = inlined_call_operand.vmem [shape: f32[8,1], index: 5, kind: output, shape index: {}]  }
   0x1   :  { %v893_v0 = vld [vmem:[%s1180_s2 + $0x38] sm:$0xff]  ;;  %v892_v2 = vld [vmem:[%s1180_s2 + $0x30] sm:$0xff]  ;;  %v891_v8 = vld [vmem:[%s1180_s2 + $0x28] sm:$0xff] }
   0x2   :  { %v901_v1 = vld [vmem:[%s1180_s2 + $0x78] sm:$0xff]  ;;  %433 = vmatpush.bf16.msra.mxu0 %v893_v0  ;;  %v900_v3 = vld [vmem:[%s1180_s2 + $0x70] sm:$0xff]  ;;  %v899_v9 = vld [vmem:[%s1180_s2 + $0x68] sm:$0xff] }
   0x3   :  { %446 = vmatpush.bf16.msra.mxu1 %v901_v1  ;;  %v909_v4 = vld [vmem:[%s1180_s2 + $0xb8] sm:$0xff]  ;;  %v908_v6 = vld [vmem:[%s1180_s2 + $0xb0] sm:$0xff]  ;;  %v907_v10 = vld [vmem:[%s1180_s2 + $0xa8] sm:$0xff] }
   0x4   :  { %v917_v5 = vld [vmem:[%s1180_s2 + $0xf8] sm:$0xff]  ;;  %459 = vmatpush.bf16.msra.mxu2 %v909_v4  ;;  %v916_v7 = vld [vmem:[%s1180_s2 + $0xf0] sm:$0xff]  ;;  %v915_v11 = vld [vmem:[%s1180_s2 + $0xe8] sm:$0xff] }
   0x5   :  { %472 = vmatpush.bf16.msra.mxu3 %v917_v5  ;;  %v890_v12 = vld [vmem:[%s1180_s2 + $0x20] sm:$0xff]  ;;  %v889_v16 = vld [vmem:[%s1180_s2 + $0x18] sm:$0xff]  ;;  %v888_v20 = vld [vmem:[%s1180_s2 + $0x10] sm:$0xff] }
   0x6   :  { %434 = vmatpush.bf16.msra.mxu0 %v892_v2  ;;  %v898_v13 = vld [vmem:[%s1180_s2 + $0x60] sm:$0xff]  ;;  %v897_v17 = vld [vmem:[%s1180_s2 + $0x58] sm:$0xff]  ;;  %v896_v21 = vld [vmem:[%s1180_s2 + $0x50] sm:$0xff] }
   0x7   :  { %447 = vmatpush.bf16.msra.mxu1 %v900_v3  ;;  %v906_v14 = vld [vmem:[%s1180_s2 + $0xa0] sm:$0xff]  ;;  %v905_v18 = vld [vmem:[%s1180_s2 + $0x98] sm:$0xff]  ;;  %v904_v22 = vld [vmem:[%s1180_s2 + $0x90] sm:$0xff] }
   0x8   :  { %460 = vmatpush.bf16.msra.mxu2 %v908_v6  ;;  %v914_v15 = vld [vmem:[%s1180_s2 + $0xe0] sm:$0xff]  ;;  %v913_v19 = vld [vmem:[%s1180_s2 + $0xd8] sm:$0xff]  ;;  %v912_v23 = vld [vmem:[%s1180_s2 + $0xd0] sm:$0xff] }
   0x9   :  { %473 = vmatpush.bf16.msra.mxu3 %v916_v7  ;;  %v887_v24 = vld [vmem:[%s1180_s2 + $0x8] sm:$0xff]  ;;  %v25_v26 = vld [vmem:[%s1181_s1] sm:$0xff]  ;;  %v925_v34 = vld [vmem:[%s1180_s2 + $0x138] sm:$0xff] }
   0xa   :  { %435 = vmatpush.bf16.msra.mxu0 %v891_v8  ;;  %v895_v25 = vld [vmem:[%s1180_s2 + $0x48] sm:$0xff]  ;;  %v127_v29 = vunpack.c.l.b16 %v25_v26  ;;  %v128_v30 = vunpack.c.h.b16 %v25_v26  ;;  %v886_v32 = vld [vmem:[%s1180_s2] sm:$0xff]  ;;  %v933_v35 = vld [vmem:[%s1180_s2 + $0x178] sm:$0xff] }
   0xb   :  { %448 = vmatpush.bf16.msra.mxu1 %v899_v9  ;;  %v903_v27 = vld [vmem:[%s1180_s2 + $0x88] sm:$0xff]  ;;  %v894_v33 = vld [vmem:[%s1180_s2 + $0x40] sm:$0xff]  ;;  %v924_v42 = vld [vmem:[%s1180_s2 + $0x130] sm:$0xff] }
   0xc   :  { %461 = vmatpush.bf16.msra.mxu2 %v907_v10  ;;  %v911_v28 = vld [vmem:[%s1180_s2 + $0xc8] sm:$0xff]  ;;  %v902_v36 = vld [vmem:[%s1180_s2 + $0x80] sm:$0xff]  ;;  %v133_v40 = vpack.c.b16 %v127_v29, %v127_v29  ;;  %v134_v41 = vpack.c.b16 %v128_v30, %v128_v30  ;;  %v932_v43 = vld [vmem:[%s1180_s2 + $0x170] sm:$0xff] }
   0xd   :  { %474 = vmatpush.bf16.msra.mxu3 %v915_v11  ;;  %v26_v31 = vld [vmem:[%s1181_s1 + $0x8] sm:$0xff]  ;;  %v910_v37 = vld [vmem:[%s1180_s2 + $0xc0] sm:$0xff]  ;;  %v921_v50 = vld [vmem:[%s1180_s2 + $0x118] sm:$0xff] }
   0xe   :  { %436 = vmatpush.bf16.msra.mxu0 %v890_v12  ;;  %v129_v38 = vunpack.c.l.b16 %v26_v31  ;;  %v130_v39 = vunpack.c.h.b16 %v26_v31  ;;  %v923_v46 = vld [vmem:[%s1180_s2 + $0x128] sm:$0xff]  ;;  %v922_v48 = vld [vmem:[%s1180_s2 + $0x120] sm:$0xff]  ;;  %v929_v51 = vld [vmem:[%s1180_s2 + $0x158] sm:$0xff] }
   0xf   :  { %449 = vmatpush.bf16.msra.mxu1 %v898_v13  ;;  %v931_v47 = vld [vmem:[%s1180_s2 + $0x168] sm:$0xff]  ;;  %v930_v49 = vld [vmem:[%s1180_s2 + $0x160] sm:$0xff]  ;;  %v920_v52 = vld [vmem:[%s1180_s2 + $0x110] sm:$0xff] }
  0x10   :  { %462 = vmatpush.bf16.msra.mxu2 %v906_v14  ;;  %v135_v44 = vpack.c.b16 %v129_v38, %v129_v38  ;;  %v136_v45 = vpack.c.b16 %v130_v39, %v130_v39  ;;  %v928_v53 = vld [vmem:[%s1180_s2 + $0x150] sm:$0xff]  ;;  %v919_v54 = vld [vmem:[%s1180_s2 + $0x108] sm:$0xff]  ;;  %v918_v59 = vld [vmem:[%s1180_s2 + $0x100] sm:$0xff] }
  0x11   :  { %475 = vmatpush.bf16.msra.mxu3 %v914_v15  ;;  %v927_v55 = vld [vmem:[%s1180_s2 + $0x148] sm:$0xff]  ;;  %v27_v56 = vld [vmem:[%s1181_s1 + $0x10] sm:$0xff]  ;;  %v926_v60 = vld [vmem:[%s1180_s2 + $0x140] sm:$0xff] }
  0x12   :  { %437 = vmatpush.bf16.msra.mxu0 %v889_v16  ;;  %v131_v57 = vunpack.c.l.b16 %v27_v56  ;;  %v132_v58 = vunpack.c.h.b16 %v27_v56 }
  0x13   :  { %450 = vmatpush.bf16.msra.mxu1 %v897_v17  ;;  %v941_v17 = vld [vmem:[%s1182_s3 + $0x38] sm:$0xff] }
  0x14   :  { %463 = vmatpush.bf16.msra.mxu2 %v905_v18  ;;  %v137_v61 = vpack.c.b16 %v131_v57, %v131_v57  ;;  %v138_v62 = vpack.c.b16 %v132_v58, %v132_v58  ;;  %v940_v18 = vld [vmem:[%s1182_s3 + $0x30] sm:$0xff] }
  0x15   :  { %476 = vmatpush.bf16.msra.mxu3 %v913_v19  ;;  %v939_v19 = vld [vmem:[%s1182_s3 + $0x28] sm:$0xff] }
  0x16   :  { %438 = vmatpush.bf16.msra.mxu0 %v888_v20  ;;  %v938_v20 = vld [vmem:[%s1182_s3 + $0x20] sm:$0xff] }
  0x17   :  { %451 = vmatpush.bf16.msra.mxu1 %v896_v21  ;;  %v937_v21 = vld [vmem:[%s1182_s3 + $0x18] sm:$0xff] }
  0x18   :  { %464 = vmatpush.bf16.msra.mxu2 %v904_v22  ;;  %v936_v22 = vld [vmem:[%s1182_s3 + $0x10] sm:$0xff] }
  0x19   :  { %477 = vmatpush.bf16.msra.mxu3 %v912_v23  ;;  %v935_v23 = vld [vmem:[%s1182_s3 + $0x8] sm:$0xff] }
  0x1a   :  { %439 = vmatpush.bf16.msra.mxu0 %v887_v24  ;;  %v934_v24 = vld [vmem:[%s1182_s3] sm:$0xff] }
  0x1b   :  { %452 = vmatpush.bf16.msra.mxu1 %v895_v25 }
  0x1c   :  { %465 = vmatpush.bf16.msra.mxu2 %v903_v27 }
  0x1d   :  { %478 = vmatpush.bf16.msra.mxu3 %v911_v28 }
  0x1e   :  { %440 = vmatpush.bf16.msra.mxu0 %v886_v32 }
  0x1f   :  { %453 = vmatpush.bf16.msra.mxu1 %v894_v33  ;;  %v526_v33 = vstv %s1183_s0 }
  0x20   :  { %466 = vmatpush.bf16.msra.mxu2 %v902_v36  ;;  %v529_v36 = vld [vmem:[%s1184_s4] sm:$0xff] }
  0x21   :  { %479 = vmatpush.bf16.msra.mxu3 %v910_v37  ;;  %441 = vmatmul.bf16.vlgmr.msra.gmra.mxu0 %v133_v40 }
  0x22   :  { %485 = vmatpush.bf16.msrb.mxu0 %v925_v34  ;;  %454 = vmatmul.bf16.vlgmr.msra.gmra.mxu1 %v134_v41 }
  0x23   :  { %498 = vmatpush.bf16.msrb.mxu1 %v933_v35  ;;  %467 = vmatmul.bf16.vlgmr.msra.gmra.mxu2 %v135_v44 }
  0x24   :  { %480 = vmatmul.bf16.vlgmr.msra.gmra.mxu3 %v136_v45  ;;  %604 = vmatpush.bf16.msrb.mxu2 %v941_v17 }
  0x26   :  { %486 = vmatpush.bf16.msrb.mxu0 %v924_v42  ;;  %v955_v42 = vmov -1e+30  }
  0x27   :  { %499 = vmatpush.bf16.msrb.mxu1 %v932_v43  ;;  %537 = vst.msk [vmem:[#allocation3] sm:$0xff] %vm533_vm3, %v955_v42  ;;  %v618_v43 = vlaneseq }
  0x28   :  { %605 = vmatpush.bf16.msrb.mxu2 %v940_v18 }
  0x29   :  { %v619_v44 = vand.u32 127, %v618_v43 }
  0x2a   :  { %487 = vmatpush.bf16.msrb.mxu0 %v923_v46 }
  0x2b   :  { %500 = vmatpush.bf16.msrb.mxu1 %v931_v47  ;;  %vm622_vm4 = vcmp.lt.s32.totalorder %v619_v44, 16 }
  0x2c   :  { %606 = vmatpush.bf16.msrb.mxu2 %v939_v19 }
  0x2e   :  { %488 = vmatpush.bf16.msrb.mxu0 %v922_v48  ;;  %v956_v48 = vmov 0  }
  0x2f   :  { %501 = vmatpush.bf16.msrb.mxu1 %v930_v49  ;;  %945 = vset.pattern.permute.xlu1 %v956_v48  ;;  %v957_v49 = vmov 0.0  }
  0x30   :  { %607 = vmatpush.bf16.msrb.mxu2 %v938_v20  ;;  %946 = vset.pattern.permute.xlu0 %v956_v48  ;;  %538 = vst.msk [vmem:[#allocation4] sm:$0xff] %vm533_vm3, %v957_v49 }
  0x32   :  { %489 = vmatpush.bf16.msrb.mxu0 %v921_v50  ;;  %v624_v50 = vld [vmem:[#allocation3] sm:$0xff] }
  0x33   :  { %502 = vmatpush.bf16.msrb.mxu1 %v929_v51 }
  0x34   :  { %608 = vmatpush.bf16.msrb.mxu2 %v937_v21 }
  0x36   :  { %490 = vmatpush.bf16.msrb.mxu0 %v920_v52 }
  0x37   :  { %503 = vmatpush.bf16.msrb.mxu1 %v928_v53 }
  0x38   :  { %609 = vmatpush.bf16.msrb.mxu2 %v936_v22 }
  0x3a   :  { %491 = vmatpush.bf16.msrb.mxu0 %v919_v54 }
  0x3b   :  { %504 = vmatpush.bf16.msrb.mxu1 %v927_v55 }
  0x3c   :  { %610 = vmatpush.bf16.msrb.mxu2 %v935_v23 }
  0x3e   :  { %492 = vmatpush.bf16.msrb.mxu0 %v918_v59 }
  0x3f   :  { %505 = vmatpush.bf16.msrb.mxu1 %v926_v60  ;;  %v631_v60 = vld [vmem:[#allocation4] sm:$0xff] }
  0x40   :  { %611 = vmatpush.bf16.msrb.mxu2 %v934_v24 }
  0x41   :  { %493 = vmatmul.bf16.vlgmr.msrb.gmra.mxu0 %v137_v61 }
  0x42   :  { %506 = vmatmul.bf16.vlgmr.msrb.gmra.mxu1 %v138_v62 }
  0x9e   :  { %v442_v63 = vpop.f32.mrf.mxu0 }
  0x9f   :  { %v455_v0 = vpop.f32.mrf.mxu1 }
  0xa0   :  { %v456_v7 = vadd.f32 %v455_v0, %v442_v63 }
  0xa6   :  { %v444_v1 = vpop.f32.mrf.mxu0  ;;  %v468_v3 = vpop.f32.mrf.mxu2 }
  0xa7   :  { %v457_v2 = vpop.f32.mrf.mxu1  ;;  %v481_v4 = vpop.f32.mrf.mxu3  ;;  %v469_v8 = vadd.f32 %v468_v3, %v456_v7 }
  0xa9   :  { %v482_v9 = vadd.f32 %v481_v4, %v469_v8 }
  0xae   :  { %v470_v5 = vpop.f32.mrf.mxu2 }
  0xaf   :  { %v483_v6 = vpop.f32.mrf.mxu3 }
  0xbe   :  { %v494_v10 = vpop.f32.mrf.mxu0 }
  0xbf   :  { %v507_v11 = vpop.f32.mrf.mxu1  ;;  %v495_v12 = vadd.f32 %v494_v10, %v482_v9 }
  0xc1   :  { %v508_v13 = vadd.f32 %v507_v11, %v495_v12 }
  0xc3   :  { %v512_v14 = vmul.f32 %v508_v13, %v508_v13 }
  0xc5   :  { %513 = vadd.xlane.f32.xlu0 %v512_v14 }
  0xc6   :  { %v496_v15 = vpop.f32.mrf.mxu0 }
  0xc7   :  { %v509_v16 = vpop.f32.mrf.mxu1 }
 0x138   :  { %v514_v25 = vpop.xlane.xlu0 %513 }
 0x139   :  { %v515_v26 = vadd.f32 1e-12, %v514_v25 }
 0x13b   :  { %947 = vrsqrt.f32 %v515_v26  ;;  %vm522_vm1 = vweird.f32 %v515_v26 }
 0x141   :  { %v948_v27 = vpop.eup %947 }
 0x142   :  { %v517_v28 = vmul.f32 %v948_v27, %v515_v26  ;;  %vm523_vm0 = vweird.f32 %v948_v27 }
 0x143   :  { %vm524_vm2 = vmor %vm522_vm1, %vm523_vm0 }
 0x144   :  { %v518_v29 = vmul.f32 %v948_v27, %v517_v28 }
 0x146   :  { %v519_v30 = vmul.f32 0.5, %v518_v29 }
 0x148   :  { %v520_v31 = vsub.f32 1.5, %v519_v30 }
 0x14a   :  { %v521_v32 = vmul.f32 %v948_v27, %v520_v31 }
 0x14c   :  { %v525_v34 = vsel %vm524_vm2, %v948_v27, %v521_v32 }
 0x14d   :  { %v527_v35 = vmul.f32 %v526_v33, %v525_v34 }
 0x14f   :  { %v528_v37 = vmul.f32 %v527_v35, %v508_v13 }
 0x151   :  { %v530_v38 = vmul.f32 %v529_v36, %v528_v37  ;;  %v535_v39 = vpack.c.bf16 %v528_v37, %v528_v37 }
 0x153   :  { %536 = vst [vmem:[#allocation2] sm:$0xf] %v535_v39  ;;  %531 = vadd.xlane.f32.xlu2 %v530_v38 }
 0x15a   :  { %v539_v40 = vld [vmem:[#allocation2] sm:$0xf] }
 0x15b   :  { %612 = vmatmul.bf16.vlgmr.msrb.gmra.mxu2 %v539_v40 }
 0x1c6   :  { %v532_v41 = vpop.xlane.xlu2 %531 }
 0x1c7   :  { %534 = vst.msk [vmem:[#allocation5] sm:$0xff] %vm533_vm3, %v532_v41 }
 0x1ce   :  { %v655_v5 = vld [vmem:[#allocation5] sm:$0xff] }
 0x1de   :  { %v613_v45 = vpop.f32.mrf.mxu2 }
 0x1df   :  { %v623_v46 = vsel %vm622_vm4, %v613_v45, -1e+30 }
 0x1e0   :  { %625 = vmax.xlane.f32.xlu0 %v623_v46 }
 0x1e6   :  { %v615_v47 = vpop.f32.mrf.mxu2 }
 0x253   :  { %v626_v51 = vpop.xlane.xlu0 %625 }
 0x254   :  { %v627_v52 = vmax.f32 %v624_v50, %v626_v51 }
 0x256   :  { %v628_v53 = vsub.f32 %v624_v50, %v627_v52  ;;  %646 = vst.msk [vmem:[#allocation3] sm:$0xff] %vm533_vm3, %v627_v52  ;;  %635 = vperm.xlu1 %945, %v627_v52  }
 0x258   :  { %v629_v58 = vmul.f32 1.442695, %v628_v53 }
 0x25d   :  { %v653_v3 = vld [vmem:[#allocation3] sm:$0xff] }
 0x2c8   :  { %v636_v54 = vpop.permute.xlu1 %635 }
 0x2c9   :  { %v638_v55 = vsub.f32 %v623_v46, %v636_v54 }
 0x2cb   :  { %v639_v56 = vmul.f32 1.442695, %v638_v55 }
 0x2cd   :  { %949 = vpow2.f32 %v639_v56 }
 0x2ce   :  { %951 = vpow2.f32 %v629_v58 }
 0x2d3   :  { %v950_v57 = vpop.eup %949 }
 0x2d4   :  { %641 = vadd.xlane.f32.xlu1 %v950_v57  ;;  %v952_v59 = vpop.eup %951 }
 0x2d5   :  { %v632_v61 = vmul.f32 %v952_v59, %v631_v60 }
 0x347   :  { %v642_v62 = vpop.xlane.xlu1 %641 }
 0x348   :  { %v643_v63 = vadd.f32 %v642_v62, %v632_v61 }
 0x34a   :  { %645 = vst.msk [vmem:[#allocation4] sm:$0xff] %vm533_vm3, %v643_v63 }
 0x351   :  { %v650_v0 = vld [vmem:[#allocation4] sm:$0xff] }
 0x352   :  { %953 = vlog2.f32 %v650_v0 }
 0x358   :  { %v954_v1 = vpop.eup %953 }
 0x359   :  { %v652_v2 = vmul.f32 0.6931472, %v954_v1 }
 0x35b   :  { %v654_v4 = vadd.f32 %v653_v3, %v652_v2 }
 0x35d   :  { %v656_v6 = vsub.f32 %v654_v4, %v655_v5 }
 0x35f   :  { %657 = vst.msk [vmem:[%s1185_s5] sm:$0xff] %vm533_vm3, %v656_v6 }

</bundles_post_ra>
